<compile_context>
chip_gen: v7x
topology: tpu7x:2x2x1
jax: 0.10.0
libtpu: 0.0.40
codegen_flags: <defaults>
</compile_context>

<pallas_src>
import numpy as np
import jax
import jax.numpy as jnp
from jax.experimental import pallas as pl
from jax.experimental.pallas import tpu as pltpu


def _round_up(x, m):
    return ((x + m - 1) // m) * m


def onn_kernel(xin_ref,
               wA_ref, bA_ref,          # fused first layer: (nf+kd, 2H), (1, 2H)
               wl1_ref, bl1_ref,        # logit head: (1, H), (1, 1)
               w1_ref, b1_ref,          # DNN layer 2: (H, H), (1, H)
               wout_ref,                # dnn_linear (no bias): (1, H)
               y_ref):
    f32 = jnp.float32
    H = w1_ref.shape[0]

    # --- fused first layer: [X | dnn_in] @ blockdiag(wl0, w0) -> (tb, 2H) ---
    a = jnp.dot(xin_ref[...], wA_ref[...], preferred_element_type=f32) + bA_ref[...]
    a = jnp.maximum(a, 0.0)
    h = a[:, :H]      # logit-path hidden   (lane-aligned slice, free)
    z = a[:, H:]      # DNN first hidden

    # --- logit path head: Linear(128->1) -> ReLU   (VPU mul + XLU row-reduce) ---
    logit = jnp.sum(h * wl1_ref[...], axis=-1, keepdims=True) + bl1_ref[...]
    logit = jnp.maximum(logit, 0.0)
    # TODO(synk): nn.Dropout of the logit path is identity here (eval mode).

    # --- DNN second layer: Linear(128->128) -> ReLU ---
    z = jnp.dot(z.astype(w1_ref.dtype), w1_ref[...],
                preferred_element_type=f32) + b1_ref[...]
    z = jnp.maximum(z, 0.0)

    # --- dnn_linear (no bias) as mul + row-reduce, residual add, sigmoid ---
    dnn_logit = jnp.sum(z * wout_ref[...], axis=-1, keepdims=True)
    y_ref[...] = jax.nn.sigmoid(dnn_logit + logit)


def onn_forward(X, dense_input, eprod, params, *, block_b=1024):
    """X: (B, num_feats) f32; dense_input: (B, nd); eprod: (B, num_pairs*E).
    params holds the original-shaped f32 weights."""
    f32, bf16 = jnp.float32, jnp.bfloat16
    B, nf = X.shape

    # Single streamed activation: [X | dense | eprod]  (concat done once in XLA).
    dnn_in = jnp.concatenate([dense_input, eprod], axis=1)
    kd = dnn_in.shape[1]
    xin = jnp.concatenate([X, dnn_in], axis=1).astype(bf16)       # (B, nf+kd)
    ktot = nf + kd

    wl0 = params["wl0"]          # (nf, H)
    w0 = params["w0"]            # (kd, H)
    H = wl0.shape[1]

    # Block-diagonal fused first-layer weight (zeros contribute exact zeros).
    wA = jnp.zeros((ktot, 2 * H), f32)
    wA = wA.at[:nf, :H].set(wl0).at[nf:, H:].set(w0)
    wA = wA.astype(bf16)
    bA = jnp.concatenate([params["bl0"], params["b0"]], axis=1).astype(f32)  # (1, 2H)

    w1 = params["w1"].astype(bf16)                     # (H, H)
    b1 = params["b1"].astype(f32)                      # (1, H)
    bl1 = params["bl1"].astype(f32)                    # (1, 1)
    wl1 = params["wl1"].reshape(1, -1).astype(f32)     # (1, H) row vector
    wout = params["wout"].reshape(1, -1).astype(f32)   # (1, H) row vector

    # Batch tile: multiple of 8, <= block_b; pad B up to a tile multiple.
    tb = min(block_b, _round_up(B, 8))
    Bp = _round_up(B, tb)
    if Bp != B:
        xin = jnp.pad(xin, ((0, Bp - B), (0, 0)))

    stream = lambda i: (i, 0)   # batch-streamed blocks
    fixed = lambda i: (0, 0)    # weights: constant block index -> VMEM-resident

    grid_spec = pltpu.PrefetchScalarGridSpec(
        num_scalar_prefetch=0,
        grid=(pl.cdiv(Bp, tb),),
        in_specs=[
            pl.BlockSpec((tb, ktot), stream),
            pl.BlockSpec(wA.shape, fixed),
            pl.BlockSpec(bA.shape, fixed),
            pl.BlockSpec(wl1.shape, fixed),
            pl.BlockSpec(bl1.shape, fixed),
            pl.BlockSpec(w1.shape, fixed),
            pl.BlockSpec(b1.shape, fixed),
            pl.BlockSpec(wout.shape, fixed),
        ],
        out_specs=pl.BlockSpec((tb, 1), stream),
    )

    y = pl.pallas_call(
        onn_kernel,
        out_shape=jax.ShapeDtypeStruct((Bp, 1), f32),
        grid_spec=grid_spec,
        compiler_params=pltpu.CompilerParams(
            dimension_semantics=("parallel",)),   # megacore on v7x; harmless elsewhere
    )(xin, wA, bA, wl1, bl1, w1, b1, wout)
    return y[:B]


def onn_reference(X, dense_input, eprod, p, *, matmul_dtype=jnp.float32):
    """Pure-JAX reference mirroring the PyTorch forward (eval mode).
    matmul_dtype lets us build a bf16-operand-matched reference for tight checks."""
    f32 = jnp.float32
    hi = jax.lax.Precision.HIGHEST
    c = lambda a: a.astype(matmul_dtype)
    h = jax.nn.relu(jnp.dot(c(X), c(p["wl0"]), precision=hi,
                            preferred_element_type=f32) + p["bl0"])
    logit = jax.nn.relu(jnp.dot(h, p["wl1"], precision=hi,
                                preferred_element_type=f32) + p["bl1"])
    dnn_in = jnp.concatenate([dense_input, eprod], axis=1)
    z = jax.nn.relu(jnp.dot(c(dnn_in), c(p["w0"]), precision=hi,
                            preferred_element_type=f32) + p["b0"])
    z = jax.nn.relu(jnp.dot(c(z), c(p["w1"]), precision=hi,
                            preferred_element_type=f32) + p["b1"])
    dnn_logit = jnp.dot(z, p["wout"], precision=hi, preferred_element_type=f32)
    return jax.nn.sigmoid(dnn_logit + logit)


if __name__ == "__main__":
    B = 300               # non-multiple of the tile -> exercises pad + multi-step grid
    E = 8                 # embedding_size
    H = 128               # dnn_hidden_units = (128, 128)

    # feature config (4 sparse + 2 dense features)
    feat_size = {"C1": 7, "C2": 11, "C3": 5, "C4": 9, "I1": 1, "I2": 1}
    dnn_feature_columns = [("C1", "sparse"), ("C2", "sparse"),
                           ("C3", "sparse"), ("C4", "sparse"),
                           ("I1", "dense"), ("I2", "dense")]
    sparse_cols = [f for f in dnn_feature_columns if f[1] == "sparse"]
    dense_cols = [f for f in dnn_feature_columns if f[1] == "dense"]
    feature_index = {name: i for i, name in enumerate(feat_size)}

    num_feats = len(feat_size)                                   # 6
    num_pairs = len(sparse_cols) * (len(sparse_cols) - 1) // 2   # 6
    nd = len(dense_cols)                                         # 2
    dnn_dim = num_pairs * E + nd                                 # 50

    keys = iter(jax.random.split(jax.random.PRNGKey(0), 40))

    # --- deterministic parameter init (shapes from ONN.__init__) ---
    wl0 = jax.random.normal(next(keys), (num_feats, H), jnp.float32) * 1e-5
    bl0 = jax.random.uniform(next(keys), (1, H), jnp.float32, -1.0, 1.0) / np.sqrt(num_feats)
    wl1 = jax.random.normal(next(keys), (H, 1), jnp.float32) * 1e-5
    bl1 = jax.random.uniform(next(keys), (1, 1), jnp.float32, -1.0, 1.0) / np.sqrt(H)
    w0 = jax.random.normal(next(keys), (dnn_dim, H), jnp.float32) * 1e-4
    b0 = jax.random.uniform(next(keys), (1, H), jnp.float32, -1.0, 1.0) / np.sqrt(dnn_dim)
    w1 = jax.random.normal(next(keys), (H, H), jnp.float32) * 1e-4
    b1 = jax.random.uniform(next(keys), (1, H), jnp.float32, -1.0, 1.0) / np.sqrt(H)
    wout = jax.random.normal(next(keys), (H, 1), jnp.float32) / np.sqrt(H)

    params = {"wl0": wl0, "bl0": bl0, "wl1": wl1, "bl1": bl1,
              "w0": w0, "b0": b0, "w1": w1, "b1": b1, "wout": wout}

    # second-order (Interac) embedding tables, one pair per (i<j) of sparse feats
    pairs, emb1_tables, emb2_tables = [], [], []
    for i in range(len(sparse_cols) - 1):
        for j in range(i + 1, len(sparse_cols)):
            fn, sn = sparse_cols[i][0], sparse_cols[j][0]
            pairs.append((fn, sn))
            emb1_tables.append(
                jax.random.normal(next(keys), (feat_size[fn], E), jnp.float32) * 1e-5)
            emb2_tables.append(
                jax.random.normal(next(keys), (feat_size[sn], E), jnp.float32))

    # --- deterministic input X: (B, num_feats); sparse cols hold integer ids ---
    xkeys = jax.random.split(jax.random.PRNGKey(1), num_feats)
    sparse_names = {c[0] for c in sparse_cols}
    cols = []
    for idx, name in enumerate(feat_size):
        if name in sparse_names:
            cols.append(jax.random.randint(
                xkeys[idx], (B,), 0, feat_size[name]).astype(jnp.float32))
        else:
            cols.append(jax.random.normal(xkeys[idx], (B,), jnp.float32))
    X = jnp.stack(cols, axis=1)

    # --- glue: dense slice + second-order embedding gathers + pair products ---
    dense_input = jnp.stack([X[:, feature_index[c[0]]] for c in dense_cols], axis=1)
    e1_list, e2_list = [], []
    for pidx, (fn, sn) in enumerate(pairs):
        i1 = X[:, feature_index[fn]].astype(jnp.int32)
        i2 = X[:, feature_index[sn]].astype(jnp.int32)
        e1_list.append(jnp.take(emb1_tables[pidx], i1, axis=0))   # (B, E)
        e2_list.append(jnp.take(emb2_tables[pidx], i2, axis=0))   # (B, E)
    e1f = jnp.concatenate(e1_list, axis=1)   # (B, num_pairs*E), torch flatten order
    e2f = jnp.concatenate(e2_list, axis=1)
    eprod = e1f * e2f                        # pair product fused with gathers by XLA

    # --- run kernel and check against references ---
    y = onn_forward(X, dense_input, eprod, params, block_b=128)
    y = jax.block_until_ready(y)

    # tight check vs a reference with the same bf16 matmul-operand casts
    y_ref_bf16 = onn_reference(X, dense_input, eprod, params, matmul_dtype=jnp.bfloat16)
    np.testing.assert_allclose(np.asarray(y), np.asarray(y_ref_bf16),
                               rtol=1e-4, atol=1e-5)
    # loose check vs the full-f32 reference (bf16 operand rounding only)
    y_ref_f32 = onn_reference(X, dense_input, eprod, params, matmul_dtype=jnp.float32)
    np.testing.assert_allclose(np.asarray(y), np.asarray(y_ref_f32),
                               rtol=0, atol=5e-3)
    assert y.shape == (B, 1)

    print("KERNEL_OK")
</pallas_src>

<mosaic_0001>
module attributes {stable_mosaic.version = 11 : i64} {
  func.func @onn_kernel(%arg0: i32, %arg1: memref<128x56xbf16, #tpu.memory_space<vmem>>, %arg2: memref<56x256xbf16, #tpu.memory_space<vmem>>, %arg3: memref<1x256xf32, #tpu.memory_space<vmem>>, %arg4: memref<1x128xf32, #tpu.memory_space<vmem>>, %arg5: memref<1x1xf32, #tpu.memory_space<vmem>>, %arg6: memref<128x128xbf16, #tpu.memory_space<vmem>>, %arg7: memref<1x128xf32, #tpu.memory_space<vmem>>, %arg8: memref<1x128xf32, #tpu.memory_space<vmem>>, %arg9: memref<128x1xf32, #tpu.memory_space<vmem>>) attributes {dimension_semantics = [#tpu.dimension_semantics<parallel>], iteration_bounds = array<i64: 3>, scalar_prefetch = 0 : i64, scratch_operands = 0 : i64, tpu.core_type = #tpu.core_type<tc>, window_params = [{transform_indices = @transform_0, window_bounds = array<i64: 128, 56>}, {pipeline_mode = #tpu.pipeline_mode<synchronous>, transform_indices = @transform_1, window_bounds = array<i64: 56, 256>}, {pipeline_mode = #tpu.pipeline_mode<synchronous>, transform_indices = @transform_2, window_bounds = array<i64: 1, 256>}, {pipeline_mode = #tpu.pipeline_mode<synchronous>, transform_indices = @transform_3, window_bounds = array<i64: 1, 128>}, {pipeline_mode = #tpu.pipeline_mode<synchronous>, transform_indices = @transform_4, window_bounds = array<i64: 1, 1>}, {pipeline_mode = #tpu.pipeline_mode<synchronous>, transform_indices = @transform_5, window_bounds = array<i64: 128, 128>}, {pipeline_mode = #tpu.pipeline_mode<synchronous>, transform_indices = @transform_6, window_bounds = array<i64: 1, 128>}, {pipeline_mode = #tpu.pipeline_mode<synchronous>, transform_indices = @transform_7, window_bounds = array<i64: 1, 128>}, {transform_indices = @transform_8, window_bounds = array<i64: 128, 1>}]} {
    %c0 = arith.constant 0 : index
    %c0_0 = arith.constant 0 : index
    %0 = vector.load %arg1[%c0, %c0_0] : memref<128x56xbf16, #tpu.memory_space<vmem>>, vector<128x56xbf16>
    %c0_1 = arith.constant 0 : index
    %c0_2 = arith.constant 0 : index
    %1 = vector.load %arg2[%c0_1, %c0_2] : memref<56x256xbf16, #tpu.memory_space<vmem>>, vector<56x256xbf16>
    %cst = arith.constant dense<0.000000e+00> : vector<128x256xf32>
    %2 = tpu.matmul %0, %1, %cst {dimension_numbers = #tpu.dot_dimension_numbers<[1], [0], [0], [1], [0, 0, 1, 1], [], []>} : vector<128x56xbf16>, vector<56x256xbf16>, vector<128x256xf32> -> vector<128x256xf32>
    %c0_3 = arith.constant 0 : index
    %c0_4 = arith.constant 0 : index
    %3 = vector.load %arg3[%c0_3, %c0_4] : memref<1x256xf32, #tpu.memory_space<vmem>>, vector<1x256xf32>
    %4 = vector.broadcast %3 : vector<1x256xf32> to vector<128x256xf32>
    %5 = arith.addf %2, %4 : vector<128x256xf32>
    %cst_5 = arith.constant 0.000000e+00 : f32
    %6 = vector.broadcast %cst_5 : f32 to vector<128x256xf32>
    %7 = arith.maximumf %5, %6 : vector<128x256xf32>
    %8 = vector.extract_strided_slice %7 {offsets = [0, 0], sizes = [128, 128], strides = [1, 1]} : vector<128x256xf32> to vector<128x128xf32>
    %9 = vector.extract_strided_slice %7 {offsets = [0, 128], sizes = [128, 128], strides = [1, 1]} : vector<128x256xf32> to vector<128x128xf32>
    %c0_6 = arith.constant 0 : index
    %c0_7 = arith.constant 0 : index
    %10 = vector.load %arg4[%c0_6, %c0_7] : memref<1x128xf32, #tpu.memory_space<vmem>>, vector<1x128xf32>
    %11 = vector.broadcast %10 : vector<1x128xf32> to vector<128x128xf32>
    %12 = arith.mulf %8, %11 : vector<128x128xf32>
    %cst_8 = arith.constant dense<0.000000e+00> : vector<128xf32>
    %13 = vector.multi_reduction <add>, %12, %cst_8 [1] : vector<128x128xf32> to vector<128xf32>
    %14 = vector.shape_cast %13 : vector<128xf32> to vector<128x1xf32>
    %c0_9 = arith.constant 0 : index
    %c0_10 = arith.constant 0 : index
    %15 = vector.load %arg5[%c0_9, %c0_10] : memref<1x1xf32, #tpu.memory_space<vmem>>, vector<1x1xf32>
    %16 = vector.broadcast %15 : vector<1x1xf32> to vector<128x1xf32>
    %17 = arith.addf %14, %16 : vector<128x1xf32>
    %cst_11 = arith.constant 0.000000e+00 : f32
    %18 = vector.broadcast %cst_11 : f32 to vector<128x1xf32>
    %19 = arith.maximumf %17, %18 : vector<128x1xf32>
    %20 = arith.truncf %9 : vector<128x128xf32> to vector<128x128xbf16>
    %c0_12 = arith.constant 0 : index
    %c0_13 = arith.constant 0 : index
    %21 = vector.load %arg6[%c0_12, %c0_13] : memref<128x128xbf16, #tpu.memory_space<vmem>>, vector<128x128xbf16>
    %cst_14 = arith.constant dense<0.000000e+00> : vector<128x128xf32>
    %22 = tpu.matmul %20, %21, %cst_14 {dimension_numbers = #tpu.dot_dimension_numbers<[1], [0], [0], [1], [0, 0, 1, 1], [], []>} : vector<128x128xbf16>, vector<128x128xbf16>, vector<128x128xf32> -> vector<128x128xf32>
    %c0_15 = arith.constant 0 : index
    %c0_16 = arith.constant 0 : index
    %23 = vector.load %arg7[%c0_15, %c0_16] : memref<1x128xf32, #tpu.memory_space<vmem>>, vector<1x128xf32>
    %24 = vector.broadcast %23 : vector<1x128xf32> to vector<128x128xf32>
    %25 = arith.addf %22, %24 : vector<128x128xf32>
    %cst_17 = arith.constant 0.000000e+00 : f32
    %26 = vector.broadcast %cst_17 : f32 to vector<128x128xf32>
    %27 = arith.maximumf %25, %26 : vector<128x128xf32>
    %c0_18 = arith.constant 0 : index
    %c0_19 = arith.constant 0 : index
    %28 = vector.load %arg8[%c0_18, %c0_19] : memref<1x128xf32, #tpu.memory_space<vmem>>, vector<1x128xf32>
    %29 = vector.broadcast %28 : vector<1x128xf32> to vector<128x128xf32>
    %30 = arith.mulf %27, %29 : vector<128x128xf32>
    %cst_20 = arith.constant dense<0.000000e+00> : vector<128xf32>
    %31 = vector.multi_reduction <add>, %30, %cst_20 [1] : vector<128x128xf32> to vector<128xf32>
    %32 = vector.shape_cast %31 : vector<128xf32> to vector<128x1xf32>
    %33 = arith.addf %32, %19 : vector<128x1xf32>
    %34 = arith.negf %33 : vector<128x1xf32>
    %35 = math.exp %34 : vector<128x1xf32>
    %cst_21 = arith.constant 1.000000e+00 : f32
    %36 = vector.broadcast %cst_21 : f32 to vector<128x1xf32>
    %37 = arith.addf %36, %35 : vector<128x1xf32>
    %38 = arith.divf %36, %37 : vector<128x1xf32>
    %c0_22 = arith.constant 0 : index
    %c0_23 = arith.constant 0 : index
    %39 = vector.load %arg9[%c0_22, %c0_23] : memref<128x1xf32, #tpu.memory_space<vmem>>, vector<128x1xf32>
    tpu.vector_store %arg9[%c0_22, %c0_23], %38 {strides = array<i32>} : memref<128x1xf32, #tpu.memory_space<vmem>>, vector<128x1xf32>,
    return
  }
  func.func @transform_0(%arg0: i32) -> (i32, i32) {
    %c0_i32 = arith.constant 0 : i32
    %c0_i32_0 = arith.constant 0 : i32
    return %arg0, %c0_i32 : i32, i32
  }
  func.func @transform_1(%arg0: i32) -> (i32, i32) {
    %c0_i32 = arith.constant 0 : i32
    %c0_i32_0 = arith.constant 0 : i32
    %c0_i32_1 = arith.constant 0 : i32
    return %c0_i32, %c0_i32_0 : i32, i32
  }
  func.func @transform_2(%arg0: i32) -> (i32, i32) {
    %c0_i32 = arith.constant 0 : i32
    %c0_i32_0 = arith.constant 0 : i32
    %c0_i32_1 = arith.constant 0 : i32
    return %c0_i32, %c0_i32_0 : i32, i32
  }
  func.func @transform_3(%arg0: i32) -> (i32, i32) {
    %c0_i32 = arith.constant 0 : i32
    %c0_i32_0 = arith.constant 0 : i32
    %c0_i32_1 = arith.constant 0 : i32
    return %c0_i32, %c0_i32_0 : i32, i32
  }
  func.func @transform_4(%arg0: i32) -> (i32, i32) {
    %c0_i32 = arith.constant 0 : i32
    %c0_i32_0 = arith.constant 0 : i32
    %c0_i32_1 = arith.constant 0 : i32
    return %c0_i32, %c0_i32_0 : i32, i32
  }
  func.func @transform_5(%arg0: i32) -> (i32, i32) {
    %c0_i32 = arith.constant 0 : i32
    %c0_i32_0 = arith.constant 0 : i32
    %c0_i32_1 = arith.constant 0 : i32
    return %c0_i32, %c0_i32_0 : i32, i32
  }
  func.func @transform_6(%arg0: i32) -> (i32, i32) {
    %c0_i32 = arith.constant 0 : i32
    %c0_i32_0 = arith.constant 0 : i32
    %c0_i32_1 = arith.constant 0 : i32
    return %c0_i32, %c0_i32_0 : i32, i32
  }
  func.func @transform_7(%arg0: i32) -> (i32, i32) {
    %c0_i32 = arith.constant 0 : i32
    %c0_i32_0 = arith.constant 0 : i32
    %c0_i32_1 = arith.constant 0 : i32
    return %c0_i32, %c0_i32_0 : i32, i32
  }
  func.func @transform_8(%arg0: i32) -> (i32, i32) {
    %c0_i32 = arith.constant 0 : i32
    %c0_i32_0 = arith.constant 0 : i32
    return %arg0, %c0_i32 : i32, i32
  }
}

</mosaic_0001>

<bundles_post_ra>
// kernel: tpu_custom_call.1
= control target key start
LH: loop header
LB: loop body
LE: loop exit
PB: predicated region body
PF: predicated region fallthrough
CT: control target
= control target key end

     0   :  { %s1394_s29 = smov 0   ;;  %s1656_s0 = inlined_call_operand.vmem [shape: bf16[384,56], index: 0, kind: input, shape index: {}]   ;;  %s1657_s1 = inlined_call_operand.vmem [shape: bf16[56,256], index: 1, kind: input, shape index: {}]   ;;  %s1658_s2 = inlined_call_operand.vmem [shape: f32[1,256], index: 2, kind: input, shape index: {}]   ;;  %s1659_s3 = inlined_call_operand.vmem [shape: f32[1,128], index: 3, kind: input, shape index: {}]   ;;  %s1660_s4 = inlined_call_operand.<no memory space> [shape: f32[1,1], index: 4, kind: input, shape index: {}]   ;;  %s1661_s5 = inlined_call_operand.vmem [shape: bf16[128,128], index: 5, kind: input, shape index: {}]   ;;  %s1662_s6 = inlined_call_operand.vmem [shape: f32[1,128], index: 6, kind: input, shape index: {}]   ;;  %s1663_s7 = inlined_call_operand.vmem [shape: f32[1,128], index: 7, kind: input, shape index: {}]   ;;  %s1664_s8 = inlined_call_operand.vmem [shape: f32[384,1], index: 8, kind: output, shape index: {}]  }
   0x1   :  { %v13_v0 = vstv %s1660_s4 }
   0x2   :  { %14 = vst [vmem:[#allocation2] sm:$0x1] %v13_v0 }
   0x3 LB: > { %s1125_s30 = sadd.s32 4294967295, %s1343_s29   ;;  %p1129_p0 = scmp.ge.s32.totalorder %s1343_s29, 1  ;;  %s1343_s29 = sphi %s1394_s29, %s20_s29  }
   0x4   : > { %p265_p1 = scmp.lt.s32.totalorder %s1343_s29, 4 }
   0x6   : > { %p266_p2 = pnand %p1129_p0, %p265_p1 }
   0x7   : > { %v1246_v1 = vld [vmem:[%s1657_s1 + $0x4] ss:$8 sps:$4 sm:$0xff] (!%p266_p2)   ;;  %v1248_v2 = vld [vmem:[%s1657_s1] ss:$8 sps:$4 sm:$0xff] (!%p266_p2)   ;;  %v1345_v3 = vmov (!%p266_p2), 0   ;;  %s1130_s12 = sshll.u32 (!%p266_p2), %s1125_s30, 4  ;;  %v337_v28 = vlaneseq (!%p266_p2) }
   0x8   : > { %269 = sbr.rel (%p266_p2) target bundleno = 697 (0x2b9), region = 52  ;;  %486 = vmatprep.mubr.bf16.mxu0 (!%p266_p2), %v1345_v3  ;;  %454 = vmatprep.subr.bf16.mxu0 (!%p266_p2), %v1246_v1  ;;  %v1249_v4 = vld [vmem:[%s1657_s1 + $0x14] ss:$8 sps:$4 sm:$0xff] (!%p266_p2)   ;;  %p300_p3 = scmp.lt.s32.totalorder (!%p266_p2), %s1130_s12, 47  ;;  %v1251_v5 = vld [vmem:[%s1657_s1 + $0x10] ss:$8 sps:$4 sm:$0xff] (!%p266_p2)  }
   0x9   : > { %455 = vmatpush1.bf16.msra.mxu0 (!%p266_p2), %v1248_v2  ;;  %v1252_v6 = vld [vmem:[%s1657_s1 + $0x24] ss:$8 sps:$4 sm:$0xff] (!%p266_p2)   ;;  %v334_v7 = vld [vmem:[%s1657_s1 + $0x30] sm:$0xff] (!%p266_p2)  ;;  %v1254_v10 = vld [vmem:[%s1657_s1 + $0x20] ss:$8 sps:$4 sm:$0xff] (!%p266_p2)   ;;  %vm447_vm0 = vcmask (!%p266_p2), 1043456  }
   0xa   : > { %456 = vmatprep.subr.bf16.mxu0 (!%p266_p2), %v1249_v4  ;;  %v1265_v8 = vld [vmem:[%s1661_s5] sm:$0xff] (!%p266_p2)   ;;  %v1266_v9 = vld [vmem:[%s1661_s5 + $0x8] sm:$0xff] (!%p266_p2)   ;;  %v1149_v11 = vcombine.high (!%p266_p2), %v334_v7, %v334_v7  ;;  %v1148_v12 = vcombine.low (!%p266_p2), %v334_v7, %v334_v7  ;;  %v1267_v13 = vld [vmem:[%s1661_s5 + $0x10] sm:$0xff] (!%p266_p2)   ;;  %vm422_vm1 = vcmask (!%p266_p2), 457728   ;;  %v338_v29 = vshrl.u32 (!%p266_p2), %v337_v28, 7 }
   0xb   : > { %1205 = vmatprep.subr.bf16.mxu1 (!%p266_p2), %v1265_v8  ;;  %v1268_v15 = vld [vmem:[%s1661_s5 + $0x18] sm:$0xff] (!%p266_p2)   ;;  %v1269_v24 = vld [vmem:[%s1661_s5 + $0x20] sm:$0xff] (!%p266_p2)   ;;  %v1270_v25 = vld [vmem:[%s1661_s5 + $0x28] sm:$0xff] (!%p266_p2)   ;;  %vm1052_vm2 = vcmask (!%p266_p2), 7168  }
   0xc   : > { %1206 = vmatpush3.bf16.msra.mxu1 (!%p266_p2), %v1265_v8  ;;  %v449_v14 = vsel (!%p266_p2), %vm447_vm0, %v1148_v12, 0  ;;  %v1271_v26 = vld [vmem:[%s1661_s5 + $0x30] sm:$0xff] (!%p266_p2)   ;;  %v1272_v27 = vld [vmem:[%s1661_s5 + $0x38] sm:$0xff] (!%p266_p2)   ;;  %v339_v30 = vsub.s32 (!%p266_p2), 0, %v338_v29  ;;  %v335_v31 = vld [vmem:[%s1658_s2] sm:$0x3] (!%p266_p2) }
   0xd   : > { %457 = vmatpush1.bf16.msra.mxu0 (!%p266_p2), %v1251_v5  ;;  %1207 = vmatprep.subr.bf16.mxu1 (!%p266_p2), %v1266_v9  ;;  %v343_v32 = vsub.s32 (!%p266_p2), 1, %v338_v29  ;;  %v1483_v40 = vld [vmem:[%s1659_s3] ss:$0 sm:$0xff] (!%p266_p2) }
   0xe   : > { %458 = vmatprep.subr.bf16.mxu0 (!%p266_p2), %v1252_v6  ;;  %v1474_v33 = vrot.slane (!%p266_p2), %v335_v31, %v339_v30 }
   0xf   : > { %s1666_s12 = smov (!%p300_p3, %s1130_s12), 47  ;;  %v1476_v34 = vrot.slane %v335_v31, %v343_v32 }
  0x10   : > { %s1131_s23 = sshll.u32 %s1666_s12, 2  ;;  %1208 = vmatpush3.bf16.msra.mxu1 %v1266_v9 }
  0x11   : > { %s1435_s9 = scalar_lea.vmem %s1656_s0, %s1131_s23  ;;  %459 = vmatpush1.bf16.msra.mxu0 %v1254_v10  ;;  %1209 = vmatprep.subr.bf16.mxu1 %v1267_v13 }
  0x12   : > { %1150 = vmatprep.subr.msk.bf16.mxu0 %vm447_vm0, %v1149_v11  ;;  %v1257_v16 = vld [vmem:[%s1435_s9] sm:$0xff]   ;;  %v1258_v17 = vld [vmem:[%s1435_s9 + $0x8] sm:$0xff]   ;;  %v1259_v18 = vld [vmem:[%s1435_s9 + $0x10] sm:$0xff]  }
  0x13   : > { %v1260_v19 = vld [vmem:[%s1435_s9 + $0x18] sm:$0xff]   ;;  %v1261_v20 = vld [vmem:[%s1435_s9 + $0x20] sm:$0xff]   ;;  %v1262_v21 = vld [vmem:[%s1435_s9 + $0x28] sm:$0xff]  }
  0x14   : > { %1210 = vmatpush3.bf16.msra.mxu1 %v1267_v13  ;;  %v1263_v22 = vld [vmem:[%s1435_s9 + $0x30] sm:$0xff]   ;;  %v1264_v23 = vld [vmem:[%s1435_s9 + $0x38] sm:$0xff]   ;;  %s1133_s9 = sshll.u32 %s1666_s12, 3 }
  0x15   : > { %461 = vmatpush1.bf16.msra.mxu0 %v449_v14  ;;  %1211 = vmatprep.subr.bf16.mxu1 %v1268_v15  ;;  %s1603_s11 = scalar_lea.vmem %s1664_s8, %s1133_s9 }
  0x18   : > { %1151 = vmatmul.mubr.msk.bf16.vlgmr.msra.gmra.mrb[0].mxu0 %vm422_vm1, %v1257_v16  ;;  %1212 = vmatpush3.bf16.msra.mxu1 %v1268_v15 }
  0x19   : > { %496 = vmatprep.mubr.bf16.mxu0 %v1345_v3  ;;  %1213 = vmatprep.subr.bf16.mxu1 %v1269_v24 }
  0x1c   : > { %1214 = vmatpush3.bf16.msra.mxu1 %v1269_v24 }
  0x1d   : > { %1215 = vmatprep.subr.bf16.mxu1 %v1270_v25 }
  0x20   : > { %1152 = vmatmul.mubr.msk.bf16.gmra.mrb[4].mxu0 %vm422_vm1, %v1258_v17  ;;  %1216 = vmatpush3.bf16.msra.mxu1 %v1270_v25 }
  0x21   : > { %506 = vmatprep.mubr.bf16.mxu0 %v1345_v3  ;;  %1217 = vmatprep.subr.bf16.mxu1 %v1271_v26 }
  0x24   : > { %1218 = vmatpush3.bf16.msra.mxu1 %v1271_v26 }
  0x25   : > { %1219 = vmatprep.subr.bf16.mxu1 %v1272_v27 }
  0x28   : > { %1153 = vmatmul.mubr.msk.bf16.gmra.mrb[8].mxu0 %vm422_vm1, %v1259_v18  ;;  %1220 = vmatpush3.bf16.msra.mxu1 %v1272_v27 }
  0x29   : > { %516 = vmatprep.mubr.bf16.mxu0 %v1345_v3 }
  0x30   : > { %1154 = vmatmul.mubr.msk.bf16.gmra.mrb[12].mxu0 %vm422_vm1, %v1260_v19 }
  0x31   : > { %526 = vmatprep.mubr.bf16.mxu0 %v1345_v3 }
  0x38   : > { %1155 = vmatmul.mubr.msk.bf16.gmra.mrb[16].mxu0 %vm422_vm1, %v1261_v20 }
  0x39   : > { %536 = vmatprep.mubr.bf16.mxu0 %v1345_v3 }
  0x40   : > { %1156 = vmatmul.mubr.msk.bf16.gmra.mrb[20].mxu0 %vm422_vm1, %v1262_v21 }
  0x41   : > { %546 = vmatprep.mubr.bf16.mxu0 %v1345_v3 }
  0x48   : > { %1157 = vmatmul.mubr.msk.bf16.gmra.mrb[24].mxu0 %vm422_vm1, %v1263_v22 }
  0x49   : > { %556 = vmatprep.mubr.bf16.mxu0 %v1345_v3 }
  0x50   : > { %1158 = vmatmul.mubr.msk.bf16.gmra.mrb[28].mxu0 %vm422_vm1, %v1264_v23 }
  0xeb   : > { %v488_v35 = vpop.f32.mrb[0].mxu0 }
  0xec   : > { %v489_v36 = vadd.f32 %v488_v35, %v1474_v33  ;;  %v490_v37 = vpop.f32.mrb[1].mxu0 }
  0xed   : > { %v491_v38 = vadd.f32 %v490_v37, %v1476_v34  ;;  %v492_v39 = vpop.f32.mrb[2].mxu0 }
  0xee   : > { %v567_v41 = vmax.f32 %v489_v36, 0.0  ;;  %v493_v42 = vadd.f32 %v492_v39, %v1474_v33  ;;  %v494_v43 = vpop.f32.mrb[3].mxu0 }
  0xef   : > { %v495_v44 = vadd.f32 %v494_v43, %v1476_v34  ;;  %v568_v47 = vmax.f32 %v491_v38, 0.0 }
  0xf0   : > { %v569_v45 = vmax.f32 %v493_v42, 0.0  ;;  %v606_v46 = vmul.f32 %v1483_v40, %v567_v41 }
  0xf1   : > { %v570_v48 = vmax.f32 %v495_v44, 0.0 }
  0xf2   : > { %622 = vadd.xlane.f32.xlu0 %v606_v46  ;;  %v607_v53 = vmul.f32 %v1483_v40, %v569_v45 }
  0xf3   : > { %v498_v49 = vpop.f32.mrb[4].mxu0  ;;  %v693_v50 = vpack.c.bf16 %v570_v48, %v568_v47 }
  0xf4   : > { %v499_v51 = vadd.f32 %v498_v49, %v1474_v33  ;;  %v500_v52 = vpop.f32.mrb[5].mxu0 }
  0xf5   : > { %v501_v54 = vadd.f32 %v500_v52, %v1476_v34  ;;  %v502_v55 = vpop.f32.mrb[6].mxu0  ;;  %1221 = vmatprep.mubr.bf16.mxu1 %v693_v50 }
  0xf6   : > { %v571_v56 = vmax.f32 %v499_v51, 0.0  ;;  %v503_v57 = vadd.f32 %v502_v55, %v1474_v33  ;;  %v504_v58 = vpop.f32.mrb[7].mxu0  ;;  %624 = vadd.xlane.f32.xlu0 %v607_v53 }
  0xf7   : > { %v505_v59 = vadd.f32 %v504_v58, %v1476_v34  ;;  %v572_v62 = vmax.f32 %v501_v54, 0.0 }
  0xf8   : > { %v573_v60 = vmax.f32 %v503_v57, 0.0  ;;  %v608_v61 = vmul.f32 %v1483_v40, %v571_v56 }
  0xf9   : > { %v574_v63 = vmax.f32 %v505_v59, 0.0 }
  0xfa   : > { %626 = vadd.xlane.f32.xlu1 %v608_v61  ;;  %v609_v4 = vmul.f32 %v1483_v40, %v573_v60 }
  0xfb   : > { %v694_v0 = vpack.c.bf16 %v574_v63, %v572_v62  ;;  %v508_v1 = vpop.f32.mrb[8].mxu0 }
  0xfc   : > { %v509_v2 = vadd.f32 %v508_v1, %v1474_v33  ;;  %v510_v3 = vpop.f32.mrb[9].mxu0 }
  0xfd   : > { %v511_v5 = vadd.f32 %v510_v3, %v1476_v34  ;;  %v512_v6 = vpop.f32.mrb[10].mxu0  ;;  %1222 = vmatmul.mubr.bf16.vlgmr.msra.gmra.mrb[0].mxu1 %v694_v0 }
  0xfe   : > { %v575_v7 = vmax.f32 %v509_v2, 0.0  ;;  %v513_v8 = vadd.f32 %v512_v6, %v1474_v33  ;;  %v514_v9 = vpop.f32.mrb[11].mxu0  ;;  %628 = vadd.xlane.f32.xlu1 %v609_v4 }
  0xff   : > { %v515_v10 = vadd.f32 %v514_v9, %v1476_v34  ;;  %v576_v13 = vmax.f32 %v511_v5, 0.0 }
 0x100   : > { %v577_v11 = vmax.f32 %v513_v8, 0.0  ;;  %v610_v12 = vmul.f32 %v1483_v40, %v575_v7 }
 0x101   : > { %v578_v14 = vmax.f32 %v515_v10, 0.0 }
 0x102   : > { %630 = vadd.xlane.f32.xlu0 %v610_v12  ;;  %v611_v15 = vmul.f32 %v1483_v40, %v577_v11 }
 0x103   : > { %v695_v16 = vpack.c.bf16 %v578_v14, %v576_v13  ;;  %v518_v17 = vpop.f32.mrb[12].mxu0 }
 0x104   : > { %v519_v18 = vadd.f32 %v518_v17, %v1474_v33  ;;  %v520_v19 = vpop.f32.mrb[13].mxu0  ;;  %632 = vadd.xlane.f32.xlu1 %v611_v15 }
 0x105   : > { %v521_v20 = vadd.f32 %v520_v19, %v1476_v34  ;;  %v522_v21 = vpop.f32.mrb[14].mxu0  ;;  %1225 = vmatprep.mubr.bf16.mxu1 %v695_v16 }
 0x106   : > { %v579_v22 = vmax.f32 %v519_v18, 0.0  ;;  %v523_v23 = vadd.f32 %v522_v21, %v1474_v33  ;;  %v524_v24 = vpop.f32.mrb[15].mxu0 }
 0x107   : > { %v525_v25 = vadd.f32 %v524_v24, %v1476_v34  ;;  %v580_v28 = vmax.f32 %v521_v20, 0.0 }
 0x108   : > { %v581_v26 = vmax.f32 %v523_v23, 0.0  ;;  %v612_v27 = vmul.f32 %v1483_v40, %v579_v22 }
 0x109   : > { %v582_v29 = vmax.f32 %v525_v25, 0.0 }
 0x10a   : > { %634 = vadd.xlane.f32.xlu0 %v612_v27  ;;  %v613_v30 = vmul.f32 %v1483_v40, %v581_v26 }
 0x10b   : > { %v696_v31 = vpack.c.bf16 %v582_v29, %v580_v28  ;;  %v528_v32 = vpop.f32.mrb[16].mxu0 }
 0x10c   : > { %v529_v35 = vadd.f32 %v528_v32, %v1474_v33  ;;  %v530_v36 = vpop.f32.mrb[17].mxu0  ;;  %636 = vadd.xlane.f32.xlu1 %v613_v30 }
 0x10d   : > { %v531_v37 = vadd.f32 %v530_v36, %v1476_v34  ;;  %v532_v38 = vpop.f32.mrb[18].mxu0  ;;  %1226 = vmatmul.mubr.bf16.gmra.mrb[4].mxu1 %v696_v31  ;;  %v1534_v31 = vld [vmem:[%s1662_s6] ss:$0 sm:$0xff] }
 0x10e   : > { %v583_v39 = vmax.f32 %v529_v35, 0.0  ;;  %v533_v41 = vadd.f32 %v532_v38, %v1474_v33  ;;  %v534_v42 = vpop.f32.mrb[19].mxu0 }
 0x10f   : > { %v535_v43 = vadd.f32 %v534_v42, %v1476_v34  ;;  %v584_v46 = vmax.f32 %v531_v37, 0.0  ;;  %v1541_v37 = vld [vmem:[%s1663_s7] ss:$0 sm:$0xff] }
 0x110   : > { %v585_v44 = vmax.f32 %v533_v41, 0.0  ;;  %v614_v45 = vmul.f32 %v1483_v40, %v583_v39 }
 0x111   : > { %v586_v47 = vmax.f32 %v535_v43, 0.0 }
 0x112   : > { %638 = vadd.xlane.f32.xlu0 %v614_v45  ;;  %v615_v48 = vmul.f32 %v1483_v40, %v585_v44 }
 0x113   : > { %v697_v49 = vpack.c.bf16 %v586_v47, %v584_v46  ;;  %v538_v50 = vpop.f32.mrb[20].mxu0 }
 0x114   : > { %v539_v51 = vadd.f32 %v538_v50, %v1474_v33  ;;  %v540_v52 = vpop.f32.mrb[21].mxu0  ;;  %640 = vadd.xlane.f32.xlu1 %v615_v48 }
 0x115   : > { %v541_v53 = vadd.f32 %v540_v52, %v1476_v34  ;;  %v542_v54 = vpop.f32.mrb[22].mxu0  ;;  %1229 = vmatprep.mubr.bf16.mxu1 %v697_v49 }
 0x116   : > { %v587_v55 = vmax.f32 %v539_v51, 0.0  ;;  %v543_v56 = vadd.f32 %v542_v54, %v1474_v33  ;;  %v544_v57 = vpop.f32.mrb[23].mxu0 }
 0x117   : > { %v545_v58 = vadd.f32 %v544_v57, %v1476_v34  ;;  %v588_v61 = vmax.f32 %v541_v53, 0.0 }
 0x118   : > { %v589_v59 = vmax.f32 %v543_v56, 0.0  ;;  %v616_v60 = vmul.f32 %v1483_v40, %v587_v55 }
 0x119   : > { %v590_v62 = vmax.f32 %v545_v58, 0.0 }
 0x11a   : > { %642 = vadd.xlane.f32.xlu0 %v616_v60  ;;  %v617_v63 = vmul.f32 %v1483_v40, %v589_v59 }
 0x11b   : > { %v698_v0 = vpack.c.bf16 %v590_v62, %v588_v61  ;;  %v548_v1 = vpop.f32.mrb[24].mxu0 }
 0x11c   : > { %v549_v2 = vadd.f32 %v548_v1, %v1474_v33  ;;  %v550_v3 = vpop.f32.mrb[25].mxu0  ;;  %644 = vadd.xlane.f32.xlu1 %v617_v63 }
 0x11d   : > { %v551_v4 = vadd.f32 %v550_v3, %v1476_v34  ;;  %v552_v5 = vpop.f32.mrb[26].mxu0  ;;  %1230 = vmatmul.mubr.bf16.gmra.mrb[8].mxu1 %v698_v0 }
 0x11e   : > { %v591_v6 = vmax.f32 %v549_v2, 0.0  ;;  %v553_v7 = vadd.f32 %v552_v5, %v1474_v33  ;;  %v554_v8 = vpop.f32.mrb[27].mxu0 }
 0x11f   : > { %v555_v9 = vadd.f32 %v554_v8, %v1476_v34  ;;  %v592_v12 = vmax.f32 %v551_v4, 0.0 }
 0x120   : > { %v593_v10 = vmax.f32 %v553_v7, 0.0  ;;  %v618_v11 = vmul.f32 %v1483_v40, %v591_v6 }
 0x121   : > { %v594_v13 = vmax.f32 %v555_v9, 0.0 }
 0x122   : > { %646 = vadd.xlane.f32.xlu0 %v618_v11  ;;  %v619_v14 = vmul.f32 %v1483_v40, %v593_v10 }
 0x123   : > { %v699_v15 = vpack.c.bf16 %v594_v13, %v592_v12  ;;  %v558_v16 = vpop.f32.mrb[28].mxu0 }
 0x124   : > { %v559_v17 = vadd.f32 %v558_v16, %v1474_v33  ;;  %v560_v18 = vpop.f32.mrb[29].mxu0  ;;  %648 = vadd.xlane.f32.xlu1 %v619_v14 }
 0x125   : > { %v561_v19 = vadd.f32 %v560_v18, %v1476_v34  ;;  %v562_v20 = vpop.f32.mrb[30].mxu0  ;;  %1233 = vmatprep.mubr.bf16.mxu1 %v699_v15 }
 0x126   : > { %v595_v21 = vmax.f32 %v559_v17, 0.0  ;;  %v563_v22 = vadd.f32 %v562_v20, %v1474_v33  ;;  %v564_v23 = vpop.f32.mrb[31].mxu0 }
 0x127   : > { %v565_v24 = vadd.f32 %v564_v23, %v1476_v34  ;;  %v596_v27 = vmax.f32 %v561_v19, 0.0 }
 0x128   : > { %v597_v25 = vmax.f32 %v563_v22, 0.0  ;;  %v620_v26 = vmul.f32 %v1483_v40, %v595_v21 }
 0x129   : > { %v598_v28 = vmax.f32 %v565_v24, 0.0 }
 0x12a   : > { %650 = vadd.xlane.f32.xlu0 %v620_v26  ;;  %v621_v29 = vmul.f32 %v1483_v40, %v597_v25 }
 0x12b   : > { %v700_v30 = vpack.c.bf16 %v598_v28, %v596_v27 }
 0x12c   : > { %652 = vadd.xlane.f32.xlu1 %v621_v29 }
 0x12d   : > { %1234 = vmatmul.mubr.bf16.gmra.mrb[12].mxu1 %v700_v30 }
 0x1d0   : > { %v1223_v33 = vpop.f32.mrb[0].mxu1 }
 0x1d1   : > { %v815_v32 = vadd.f32 %v1223_v33, %v1534_v31  ;;  %v806_v34 = vpop.f32.mrb[1].mxu1 }
 0x1d2   : > { %v807_v35 = vadd.f32 %v1534_v31, %v806_v34  ;;  %v1224_v36 = vpop.f32.mrb[2].mxu1  ;;  %v623_v34 = vpop.xlane.xlu0 %622 }
 0x1d3   : > { %v871_v40 = vmax.f32 %v815_v32, 0.0  ;;  %v818_v38 = vadd.f32 %v1224_v36, %v1534_v31  ;;  %v809_v39 = vpop.f32.mrb[3].mxu1 }
 0x1d4   : > { %v810_v41 = vadd.f32 %v1534_v31, %v809_v39  ;;  %v869_v42 = vmax.f32 %v807_v35, 0.0  ;;  %v627_v35 = vpop.xlane.xlu1 %626 }
 0x1d5   : > { %v872_v43 = vmax.f32 %v818_v38, 0.0  ;;  %v894_v44 = vmul.f32 %v1541_v37, %v871_v40 }
 0x1d6   : > { %v870_v45 = vmax.f32 %v810_v41, 0.0  ;;  %v892_v47 = vmul.f32 %v1541_v37, %v869_v42  ;;  %v625_v36 = vpop.xlane.xlu0 %624 }
 0x1d7   : > { %912 = vadd.xlane.f32.xlu0 %v894_v44  ;;  %v895_v46 = vmul.f32 %v1541_v37, %v872_v43 }
 0x1d8   : > { %v893_v48 = vmul.f32 %v1541_v37, %v870_v45  ;;  %v629_v40 = vpop.xlane.xlu1 %628 }
 0x1d9   : > { %914 = vadd.xlane.f32.xlu1 %v895_v46 }
 0x1db   : > { %908 = vadd.xlane.f32.xlu0 %v892_v47 }
 0x1dc   : > { %v633_v38 = vpop.xlane.xlu1 %632 }
 0x1dd   : > { %910 = vadd.xlane.f32.xlu1 %v893_v48 }
 0x1e0   : > { %v1227_v49 = vpop.f32.mrb[4].mxu1  ;;  %v637_v41 = vpop.xlane.xlu1 %636 }
 0x1e1   : > { %v831_v50 = vadd.f32 %v1227_v49, %v1534_v31  ;;  %v822_v51 = vpop.f32.mrb[5].mxu1 }
 0x1e2   : > { %v823_v52 = vadd.f32 %v1534_v31, %v822_v51  ;;  %v1228_v53 = vpop.f32.mrb[6].mxu1 }
 0x1e3   : > { %v875_v54 = vmax.f32 %v831_v50, 0.0  ;;  %v834_v55 = vadd.f32 %v1228_v53, %v1534_v31  ;;  %v825_v56 = vpop.f32.mrb[7].mxu1 }
 0x1e4   : > { %v826_v57 = vadd.f32 %v1534_v31, %v825_v56  ;;  %v873_v58 = vmax.f32 %v823_v52, 0.0  ;;  %v1575_v43 = vpop.xlane.xlu1 %640 }
 0x1e5   : > { %v876_v59 = vmax.f32 %v834_v55, 0.0  ;;  %v898_v60 = vmul.f32 %v1541_v37, %v875_v54 }
 0x1e6   : > { %v874_v61 = vmax.f32 %v826_v57, 0.0  ;;  %v896_v63 = vmul.f32 %v1541_v37, %v873_v58 }
 0x1e7   : > { %920 = vadd.xlane.f32.xlu0 %v898_v60  ;;  %v899_v62 = vmul.f32 %v1541_v37, %v876_v59 }
 0x1e8   : > { %v897_v0 = vmul.f32 %v1541_v37, %v874_v61  ;;  %v1579_v45 = vpop.xlane.xlu1 %644 }
 0x1e9   : > { %922 = vadd.xlane.f32.xlu1 %v899_v62 }
 0x1eb   : > { %916 = vadd.xlane.f32.xlu0 %v896_v63 }
 0x1ec   : > { %v1585_v47 = vpop.xlane.xlu1 %648 }
 0x1ed   : > { %918 = vadd.xlane.f32.xlu1 %v897_v0 }
 0x1f0   : > { %v1231_v1 = vpop.f32.mrb[8].mxu1  ;;  %v1591_v51 = vpop.xlane.xlu1 %652 }
 0x1f1   : > { %v847_v2 = vadd.f32 %v1231_v1, %v1534_v31  ;;  %v838_v3 = vpop.f32.mrb[9].mxu1 }
 0x1f2   : > { %v839_v4 = vadd.f32 %v1534_v31, %v838_v3  ;;  %v1232_v5 = vpop.f32.mrb[10].mxu1 }
 0x1f3   : > { %v879_v6 = vmax.f32 %v847_v2, 0.0  ;;  %v850_v7 = vadd.f32 %v1232_v5, %v1534_v31  ;;  %v841_v8 = vpop.f32.mrb[11].mxu1 }
 0x1f4   : > { %v842_v9 = vadd.f32 %v1534_v31, %v841_v8  ;;  %v877_v10 = vmax.f32 %v839_v4, 0.0 }
 0x1f5   : > { %v880_v11 = vmax.f32 %v850_v7, 0.0  ;;  %v902_v12 = vmul.f32 %v1541_v37, %v879_v6 }
 0x1f6   : > { %v878_v13 = vmax.f32 %v842_v9, 0.0  ;;  %v900_v15 = vmul.f32 %v1541_v37, %v877_v10 }
 0x1f7   : > { %928 = vadd.xlane.f32.xlu0 %v902_v12  ;;  %v903_v14 = vmul.f32 %v1541_v37, %v880_v11 }
 0x1f8   : > { %v901_v16 = vmul.f32 %v1541_v37, %v878_v13 }
 0x1f9   : > { %930 = vadd.xlane.f32.xlu1 %v903_v14 }
 0x1fb   : > { %924 = vadd.xlane.f32.xlu0 %v900_v15 }
 0x1fd   : > { %926 = vadd.xlane.f32.xlu1 %v901_v16 }
 0x200   : > { %v1235_v17 = vpop.f32.mrb[12].mxu1 }
 0x201   : > { %v854_v18 = vpop.f32.mrb[13].mxu1  ;;  %v863_v19 = vadd.f32 %v1235_v17, %v1534_v31 }
 0x202   : > { %v855_v20 = vadd.f32 %v1534_v31, %v854_v18  ;;  %v1236_v21 = vpop.f32.mrb[14].mxu1 }
 0x203   : > { %v857_v22 = vpop.f32.mrb[15].mxu1  ;;  %v866_v24 = vadd.f32 %v1236_v21, %v1534_v31  ;;  %v883_v26 = vmax.f32 %v863_v19, 0.0 }
 0x204   : > { %v881_v23 = vmax.f32 %v855_v20, 0.0  ;;  %v858_v25 = vadd.f32 %v1534_v31, %v857_v22  ;;  %v631_v31 = vpop.xlane.xlu0 %630 }
 0x205   : > { %v884_v29 = vmax.f32 %v866_v24, 0.0  ;;  %v906_v33 = vmul.f32 %v1541_v37, %v883_v26 }
 0x206   : > { %v882_v27 = vmax.f32 %v858_v25, 0.0  ;;  %v904_v28 = vmul.f32 %v1541_v37, %v881_v23 }
 0x207   : > { %v907_v32 = vmul.f32 %v1541_v37, %v884_v29 }
 0x208   : > { %932 = vadd.xlane.f32.xlu0 %v904_v28  ;;  %v905_v30 = vmul.f32 %v1541_v37, %v882_v27  ;;  %v635_v39 = vpop.xlane.xlu0 %634  ;;  %v1583_v37 = vld [vmem:[#allocation2] ss:$0 sm:$0xff] }
 0x209   : > { %v663_v48 = vadd.f32 %v1583_v37, %v627_v35  ;;  %v664_v50 = vadd.f32 %v1583_v37, %v629_v40  ;;  %v661_v52 = vadd.f32 %v1583_v37, %v623_v34  ;;  %v662_v55 = vadd.f32 %v1583_v37, %v625_v36 }
 0x20a   : > { %934 = vadd.xlane.f32.xlu1 %v905_v30  ;;  %v667_v6 = vadd.f32 %v1583_v37, %v635_v39  ;;  %v668_v7 = vadd.f32 %v1583_v37, %v637_v41  ;;  %v665_v9 = vadd.f32 %v1583_v37, %v631_v31  ;;  %v666_v14 = vadd.f32 %v1583_v37, %v633_v38 }
 0x20b   : > { %v679_v53 = vmax.f32 %v663_v48, 0.0  ;;  %v680_v56 = vmax.f32 %v664_v50, 0.0  ;;  %v677_v59 = vmax.f32 %v661_v52, 0.0  ;;  %v678_v63 = vmax.f32 %v662_v55, 0.0 }
 0x20c   : > { %936 = vadd.xlane.f32.xlu0 %v906_v33  ;;  %v1573_v42 = vpop.xlane.xlu0 %638  ;;  %v683_v10 = vmax.f32 %v667_v6, 0.0  ;;  %v684_v15 = vmax.f32 %v668_v7, 0.0  ;;  %v681_v20 = vmax.f32 %v665_v9, 0.0  ;;  %v682_v26 = vmax.f32 %v666_v14, 0.0 }
 0x20d   : > { %v672_v40 = vadd.f32 %v1583_v37, %v1579_v45  ;;  %v669_v39 = vadd.f32 %v1583_v37, %v1573_v42 }
 0x20e   : > { %938 = vadd.xlane.f32.xlu1 %v907_v32 }
 0x210   : > { %v1577_v44 = vpop.xlane.xlu0 %642 }
 0x211   : > { %v671_v35 = vadd.f32 %v1583_v37, %v1577_v44 }
 0x213   : > { %v687_v41 = vmax.f32 %v671_v35, 0.0 }
 0x214   : > { %v1581_v46 = vpop.xlane.xlu0 %646 }
 0x218   : > { %v1588_v49 = vpop.xlane.xlu0 %650 }
 0x264   : > { %v913_v54 = vpop.xlane.xlu0 %912 }
 0x265   : > { %v942_v57 = vadd.f32 %v913_v54, %v679_v53  ;;  %v670_v53 = vadd.f32 %v1583_v37, %v1575_v43  ;;  %v688_v54 = vmax.f32 %v672_v40, 0.0 }
 0x266   : > { %v915_v58 = vpop.xlane.xlu1 %914 }
 0x267   : > { %v1173_v60 = vmul.f32 -1.442695, %v942_v57  ;;  %v943_v61 = vadd.f32 %v915_v58, %v680_v56  ;;  %v685_v58 = vmax.f32 %v669_v39, 0.0 }
 0x268   : > { %v909_v62 = vpop.xlane.xlu0 %908 }
 0x269   : > { %1273 = vpow2.f32 %v1173_v60  ;;  %v1174_v0 = vmul.f32 -1.442695, %v943_v61  ;;  %v940_v1 = vadd.f32 %v909_v62, %v677_v59 }
 0x26a   : > { %v911_v2 = vpop.xlane.xlu1 %910 }
 0x26b   : > { %1275 = vpow2.f32 %v1174_v0  ;;  %v1171_v3 = vmul.f32 -1.442695, %v940_v1  ;;  %v941_v4 = vadd.f32 %v911_v2, %v678_v63  ;;  %v686_v0 = vmax.f32 %v670_v53, 0.0 }
 0x26d   : > { %1277 = vpow2.f32 %v1171_v3  ;;  %v1172_v5 = vmul.f32 -1.442695, %v941_v4 }
 0x26f   : > { %1279 = vpow2.f32 %v1172_v5 }
 0x273   : > { %v1274_v8 = vpop.eup %1273 }
 0x274   : > { %v1006_v11 = vadd.f32 1.0, %v1274_v8  ;;  %v921_v12 = vpop.xlane.xlu0 %920  ;;  %v673_v8 = vadd.f32 %v1583_v37, %v1581_v46  ;;  %v676_v46 = vadd.f32 %v1583_v37, %v1591_v51 }
 0x275   : > { %v1276_v13 = vpop.eup %1275  ;;  %v946_v16 = vadd.f32 %v921_v12, %v683_v10  ;;  %v674_v10 = vadd.f32 %v1583_v37, %v1585_v47  ;;  %v675_v12 = vadd.f32 %v1583_v37, %v1588_v49 }
 0x276   : > { %1281 = vrcp.f32 %v1006_v11  ;;  %v1007_v17 = vadd.f32 1.0, %v1276_v13  ;;  %v923_v18 = vpop.xlane.xlu1 %922  ;;  %v689_v14 = vmax.f32 %v673_v8, 0.0 }
 0x277   : > { %v1278_v19 = vpop.eup %1277  ;;  %v1177_v21 = vmul.f32 -1.442695, %v946_v16  ;;  %v947_v22 = vadd.f32 %v923_v18, %v684_v15  ;;  %v691_v49 = vmax.f32 %v675_v12, 0.0 }
 0x278   : > { %1283 = vrcp.f32 %v1007_v17  ;;  %v1004_v23 = vadd.f32 1.0, %v1278_v19  ;;  %v917_v24 = vpop.xlane.xlu0 %916  ;;  %v690_v19 = vmax.f32 %v674_v10, 0.0 }
 0x279   : > { %v1280_v25 = vpop.eup %1279  ;;  %1285 = vpow2.f32 %v1177_v21  ;;  %v1178_v27 = vmul.f32 -1.442695, %v947_v22  ;;  %v944_v28 = vadd.f32 %v917_v24, %v681_v20 }
 0x27a   : > { %1287 = vrcp.f32 %v1004_v23  ;;  %v1005_v29 = vadd.f32 1.0, %v1280_v25  ;;  %v919_v30 = vpop.xlane.xlu1 %918 }
 0x27b   : > { %1289 = vpow2.f32 %v1178_v27  ;;  %v1175_v33 = vmul.f32 -1.442695, %v944_v28  ;;  %v945_v32 = vadd.f32 %v919_v30, %v682_v26  ;;  %v692_v27 = vmax.f32 %v676_v46, 0.0 }
 0x27c   : > { %1291 = vrcp.f32 %v1005_v29 }
 0x27d   : > { %1293 = vpow2.f32 %v1175_v33  ;;  %v1176_v34 = vmul.f32 -1.442695, %v945_v32 }
 0x27f   : > { %1295 = vpow2.f32 %v1176_v34 }
 0x280   : > { %v1282_v36 = vpop.eup %1281 }
 0x281   : > { %1055 = vst.msk [vmem:[%s1603_s11 + $0x10] sm:$0xff] %vm1052_vm2, %v1282_v36 }
 0x282   : > { %v1284_v31 = vpop.eup %1283 }
 0x283   : > { %v1286_v38 = vpop.eup %1285  ;;  %1056 = vst.msk [vmem:[%s1603_s11 + $0x18] sm:$0xff] %vm1052_vm2, %v1284_v31 }
 0x284   : > { %v1288_v48 = vpop.eup %1287  ;;  %v1010_v50 = vadd.f32 1.0, %v1286_v38  ;;  %v929_v44 = vpop.xlane.xlu0 %928 }
 0x285   : > { %v1290_v52 = vpop.eup %1289  ;;  %1053 = vst.msk [vmem:[%s1603_s11] sm:$0xff] %vm1052_vm2, %v1288_v48  ;;  %v950_v45 = vadd.f32 %v929_v44, %v687_v41 }
 0x286   : > { %v1292_v55 = vpop.eup %1291  ;;  %1297 = vrcp.f32 %v1010_v50  ;;  %v1011_v56 = vadd.f32 1.0, %v1290_v52  ;;  %v931_v57 = vpop.xlane.xlu1 %930 }
 0x287   : > { %v1294_v42 = vpop.eup %1293  ;;  %1054 = vst.msk [vmem:[%s1603_s11 + $0x8] sm:$0xff] %vm1052_vm2, %v1292_v55  ;;  %v1181_v59 = vmul.f32 -1.442695, %v950_v45  ;;  %v951_v60 = vadd.f32 %v931_v57, %v688_v54 }
 0x288   : > { %1299 = vrcp.f32 %v1011_v56  ;;  %v1008_v61 = vadd.f32 1.0, %v1294_v42  ;;  %v925_v62 = vpop.xlane.xlu0 %924 }
 0x289   : > { %v1296_v63 = vpop.eup %1295  ;;  %1301 = vpow2.f32 %v1181_v59  ;;  %v1182_v43 = vmul.f32 -1.442695, %v951_v60  ;;  %v948_v1 = vadd.f32 %v925_v62, %v685_v58 }
 0x28a   : > { %1303 = vrcp.f32 %v1008_v61  ;;  %v1009_v2 = vadd.f32 1.0, %v1296_v63  ;;  %v927_v3 = vpop.xlane.xlu1 %926 }
 0x28b   : > { %1305 = vpow2.f32 %v1182_v43  ;;  %v1179_v4 = vmul.f32 -1.442695, %v948_v1  ;;  %v949_v5 = vadd.f32 %v927_v3, %v686_v0 }
 0x28c   : > { %1307 = vrcp.f32 %v1009_v2 }
 0x28d   : > { %1309 = vpow2.f32 %v1179_v4  ;;  %v1180_v6 = vmul.f32 -1.442695, %v949_v5 }
 0x28f   : > { %1311 = vpow2.f32 %v1180_v6 }
 0x290   : > { %v1298_v7 = vpop.eup %1297 }
 0x291   : > { %1059 = vst.msk [vmem:[%s1603_s11 + $0x30] sm:$0xff] %vm1052_vm2, %v1298_v7 }
 0x292   : > { %v1300_v9 = vpop.eup %1299 }
 0x293   : > { %v1302_v11 = vpop.eup %1301  ;;  %1060 = vst.msk [vmem:[%s1603_s11 + $0x38] sm:$0xff] %vm1052_vm2, %v1300_v9 }
 0x294   : > { %v1304_v13 = vpop.eup %1303  ;;  %v1014_v15 = vadd.f32 1.0, %v1302_v11 }
 0x295   : > { %v1306_v16 = vpop.eup %1305  ;;  %1057 = vst.msk [vmem:[%s1603_s11 + $0x20] sm:$0xff] %vm1052_vm2, %v1304_v13  ;;  %v933_v17 = vpop.xlane.xlu0 %932 }
 0x296   : > { %v1308_v18 = vpop.eup %1307  ;;  %1313 = vrcp.f32 %v1014_v15  ;;  %v1015_v47 = vadd.f32 1.0, %v1306_v16  ;;  %v952_v20 = vadd.f32 %v933_v17, %v689_v14 }
 0x297   : > { %v1310_v21 = vpop.eup %1309  ;;  %1058 = vst.msk [vmem:[%s1603_s11 + $0x28] sm:$0xff] %vm1052_vm2, %v1308_v18  ;;  %v935_v22 = vpop.xlane.xlu1 %934 }
 0x298   : > { %1315 = vrcp.f32 %v1015_v47  ;;  %v1012_v23 = vadd.f32 1.0, %v1310_v21  ;;  %v1183_v24 = vmul.f32 -1.442695, %v952_v20  ;;  %v953_v25 = vadd.f32 %v935_v22, %v690_v19 }
 0x299   : > { %v1312_v26 = vpop.eup %1311  ;;  %v937_v37 = vpop.xlane.xlu0 %936 }
 0x29a   : > { %1317 = vrcp.f32 %v1012_v23  ;;  %v1013_v51 = vadd.f32 1.0, %v1312_v26  ;;  %v1184_v28 = vmul.f32 -1.442695, %v953_v25  ;;  %v954_v29 = vadd.f32 %v937_v37, %v691_v49 }
 0x29b   : > { %1319 = vpow2.f32 %v1183_v24  ;;  %v939_v30 = vpop.xlane.xlu1 %938 }
 0x29c   : > { %1321 = vrcp.f32 %v1013_v51  ;;  %v1185_v33 = vmul.f32 -1.442695, %v954_v29  ;;  %v955_v32 = vadd.f32 %v939_v30, %v692_v27 }
 0x29d   : > { %1323 = vpow2.f32 %v1184_v28 }
 0x29e   : > { %1325 = vpow2.f32 %v1185_v33  ;;  %v1186_v34 = vmul.f32 -1.442695, %v955_v32 }
 0x2a0   : > { %v1314_v35 = vpop.eup %1313  ;;  %1327 = vpow2.f32 %v1186_v34 }
 0x2a1   : > { %1063 = vst.msk [vmem:[%s1603_s11 + $0x50] sm:$0xff] %vm1052_vm2, %v1314_v35 }
 0x2a2   : > { %v1316_v36 = vpop.eup %1315 }
 0x2a3   : > { %1064 = vst.msk [vmem:[%s1603_s11 + $0x58] sm:$0xff] %vm1052_vm2, %v1316_v36 }
 0x2a4   : > { %v1318_v40 = vpop.eup %1317 }
 0x2a5   : > { %v1320_v31 = vpop.eup %1319  ;;  %1061 = vst.msk [vmem:[%s1603_s11 + $0x40] sm:$0xff] %vm1052_vm2, %v1318_v40 }
 0x2a6   : > { %v1322_v38 = vpop.eup %1321  ;;  %v1016_v39 = vadd.f32 1.0, %v1320_v31 }
 0x2a7   : > { %v1324_v41 = vpop.eup %1323  ;;  %1062 = vst.msk [vmem:[%s1603_s11 + $0x48] sm:$0xff] %vm1052_vm2, %v1322_v38 }
 0x2a8   : > { %v1326_v48 = vpop.eup %1325  ;;  %1329 = vrcp.f32 %v1016_v39  ;;  %v1017_v50 = vadd.f32 1.0, %v1324_v41 }
 0x2a9   : > { %v1018_v44 = vadd.f32 1.0, %v1326_v48 }
 0x2aa   : > { %v1328_v52 = vpop.eup %1327  ;;  %1331 = vrcp.f32 %v1017_v50 }
 0x2ab   : > { %1333 = vrcp.f32 %v1018_v44  ;;  %v1019_v53 = vadd.f32 1.0, %v1328_v52 }
 0x2ad   : > { %1335 = vrcp.f32 %v1019_v53 }
 0x2b2   : > { %v1330_v54 = vpop.eup %1329 }
 0x2b3   : > { %1065 = vst.msk [vmem:[%s1603_s11 + $0x60] sm:$0xff] %vm1052_vm2, %v1330_v54 }
 0x2b4   : > { %v1332_v45 = vpop.eup %1331 }
 0x2b5   : > { %v1334_v55 = vpop.eup %1333  ;;  %1066 = vst.msk [vmem:[%s1603_s11 + $0x68] sm:$0xff] %vm1052_vm2, %v1332_v45 }
 0x2b6   : > { %1067 = vst.msk [vmem:[%s1603_s11 + $0x70] sm:$0xff] %vm1052_vm2, %v1334_v55 }
 0x2b7   : > { %v1336_v56 = vpop.eup %1335 }
 0x2b8   : > { %1068 = vst.msk [vmem:[%s1603_s11 + $0x78] sm:$0xff] %vm1052_vm2, %v1336_v56 }
 0x2b9 PF: > { %s20_s29 = sadd.s32 1, %s1343_s29  }
 0x2ba   : > { %p17_p4 = scmp.ge.s32.totalorder %s20_s29, 5  }
 0x2bc   :  { %19 = sbr.rel (!%p17_p4) target bundleno = 3 (0x3), region = 82 }

</bundles_post_ra>
